<compile_context>
chip_gen: v7x
topology: tpu7x:2x2x1
jax: 0.10.0
libtpu: 0.0.40
codegen_flags: <defaults>
</compile_context>

<pallas_src>
import functools
import math

import jax
import jax.numpy as jnp
from jax.experimental import pallas as pl
from jax.experimental.pallas import tpu as pltpu


def _round_up(x, m):
    return ((x + m - 1) // m) * m


# --------------------------------------------------------------------------
# Phase 1: conv-as-GEMM -> per-tile partial statistics (Y never hits HBM)
# --------------------------------------------------------------------------
def _conv_stats_kernel(p_ref, w_ref, st_ref):
    # (block_m, Kd) @ (Kd, Cpad) -> f32 accumulate on the MXU.
    y = jnp.dot(p_ref[...], w_ref[...], preferred_element_type=jnp.float32)
    s = jnp.sum(y, axis=0, keepdims=True)         # (1, Cpad)
    ss = jnp.sum(y * y, axis=0, keepdims=True)    # (1, Cpad)
    st_ref[0] = jnp.concatenate([s, ss], axis=0)  # (2, Cpad) partial stats


# --------------------------------------------------------------------------
# Phase 2: recompute GEMM tile, normalize with precomputed mean and
#          inv = 1/(sqrt(var)+eps), write output slab.
# --------------------------------------------------------------------------
def _conv_normalize_kernel(p_ref, w_ref, st_ref, o_ref):
    y = jnp.dot(p_ref[...], w_ref[...], preferred_element_type=jnp.float32)
    mean = st_ref[0:1, :]                         # (1, Cpad)
    inv = st_ref[1:2, :]                          # (1, Cpad)
    o_ref[...] = (y - mean) * inv                 # broadcast multiply, no divide


def _im2col(x_nchw, k):
    # x: (B, C, H, W) -> patches: (B*OH*OW, C*k*k); column order c*k*k + kh*k + kw
    # matches PyTorch's weight.reshape(C_out, -1).
    b, c, h, w = x_nchw.shape
    oh, ow = h - k + 1, w - k + 1
    cols = []
    for i in range(k):
        for j in range(k):
            cols.append(x_nchw[:, :, i:i + oh, j:j + ow])    # (B, C, OH, OW)
    p = jnp.stack(cols, axis=2)                              # (B, C, k*k, OH, OW)
    p = p.reshape(b, c * k * k, oh, ow)
    p = p.transpose(0, 2, 3, 1).reshape(b * oh * ow, c * k * k)
    return p, oh, ow


def fused_conv_bn(x_nchw, conv_weight, eps=1e-3, block_m=None,
                  matmul_dtype=jnp.bfloat16):
    """x: (B, C_in, H, W), conv_weight: (C_out, C_in, K, K). Returns NCHW f32."""
    b, c_in, h, w = x_nchw.shape
    c_out, _, k, _ = conv_weight.shape
    oh, ow = h - k + 1, w - k + 1
    m = b * oh * ow
    kd = c_in * k * k
    c_pad = _round_up(c_out, 128)

    # Tile over M. 512 rows ~ HBM-roofline sweet spot; fits v7x's 64 MiB VMEM
    # comfortably when double-buffered.
    if block_m is None:
        if m >= 512:
            block_m = 512
        elif m >= 128:
            block_m = 128
        else:
            block_m = _round_up(m, 16)
    m_pad = _round_up(m, block_m)
    num_tiles = m_pad // block_m

    # Host-side im2col (see TODO above), cast MXU operands to bf16 (f32 on v5e
    # if desired via matmul_dtype).
    patches, _, _ = _im2col(x_nchw, k)
    patches = patches.astype(matmul_dtype)
    patches = jnp.pad(patches, ((0, m_pad - m), (0, 0)))
    w2d = conv_weight.reshape(c_out, kd).T.astype(matmul_dtype)   # (Kd, C_out)
    w2d = jnp.pad(w2d, ((0, 0), (0, c_pad - c_out)))              # (Kd, Cpad)

    cparams = pltpu.CompilerParams(
        dimension_semantics=("parallel",),
        vmem_limit_bytes=32 * 1024 * 1024,
    )

    patch_spec = pl.BlockSpec((block_m, kd), lambda i: (i, 0))
    weight_spec = pl.BlockSpec((kd, c_pad), lambda i: (0, 0))   # fetched once

    # ---- phase 1: GEMM + per-tile partial stats (stats only to HBM) ------
    part = pl.pallas_call(
        _conv_stats_kernel,
        grid=(num_tiles,),
        in_specs=[patch_spec, weight_spec],
        out_specs=pl.BlockSpec((1, 2, c_pad), lambda i: (i, 0, 0)),
        out_shape=jax.ShapeDtypeStruct((num_tiles, 2, c_pad), jnp.float32),
        compiler_params=cparams,
    )(patches, w2d)

    # ---- tiny XLA glue: combine partials, hoist sqrt + reciprocal --------
    s = jnp.sum(part[:, 0, :], axis=0)                 # (Cpad,)
    ss = jnp.sum(part[:, 1, :], axis=0)                # (Cpad,)
    n = float(m)
    mean = s / n
    var = (ss - s * s / n) / max(n - 1.0, 1.0)         # unbiased
    var = jnp.maximum(var, 0.0)                        # cancellation guard
    inv = 1.0 / (jnp.sqrt(var) + eps)
    stats2 = jnp.stack([mean, inv], axis=0)            # (2, Cpad)

    # ---- phase 2: recompute GEMM tile and normalize -> output slab -------
    out_flat = pl.pallas_call(
        _conv_normalize_kernel,
        grid=(num_tiles,),
        in_specs=[
            patch_spec,
            weight_spec,
            pl.BlockSpec((2, c_pad), lambda i: (0, 0)),
        ],
        out_specs=pl.BlockSpec((block_m, c_pad), lambda i: (i, 0)),
        out_shape=jax.ShapeDtypeStruct((m_pad, c_pad), jnp.float32),
        compiler_params=cparams,
    )(patches, w2d, stats2)

    # Back to the PyTorch module's NCHW output layout.
    out = out_flat[:m, :c_out].reshape(b, oh, ow, c_out).transpose(0, 3, 1, 2)
    return out


def _reference(x_nchw, conv_weight, eps=1e-3):
    # Pure-JAX f32 reference of the PyTorch forward (sanity check only).
    y = jax.lax.conv_general_dilated(
        x_nchw, conv_weight, window_strides=(1, 1), padding="VALID",
        dimension_numbers=("NCHW", "OIHW", "NCHW"))
    n = y.size / y.shape[1]
    s = y.sum(axis=(0, 2, 3))
    mean = s / n
    var = ((y - mean[None, :, None, None]) ** 2).sum(axis=(0, 2, 3)) / (n - 1)
    return (y - mean[None, :, None, None]) / (jnp.sqrt(var)[None, :, None, None] + eps)


if __name__ == "__main__":
    key = jax.random.PRNGKey(0)
    kx, kw = jax.random.split(key)

    # Small shapes consistent with the module.
    batch, in_ch, out_ch, spatial, ksize = 2, 4, 8, 16, 3
    eps = 1e-3

    x = jax.random.normal(kx, (batch, in_ch, spatial, spatial), dtype=jnp.float32)

    # kaiming_uniform_(a=sqrt(5)) as in nn.init — deterministic, in-script.
    fan_in = in_ch * ksize * ksize
    gain = math.sqrt(2.0 / (1.0 + 5.0))
    bound = gain * math.sqrt(3.0 / fan_in)
    conv_weight = jax.random.uniform(
        kw, (out_ch, in_ch, ksize, ksize), minval=-bound, maxval=bound,
        dtype=jnp.float32)

    ref = _reference(x, conv_weight, eps=eps)

    # bf16 MXU operands (fast path on v6e/v7x), f32 accumulation & stats.
    fused_bf16 = jax.jit(functools.partial(
        fused_conv_bn, eps=eps, matmul_dtype=jnp.bfloat16))
    out = jax.block_until_ready(fused_bf16(x, conv_weight))
    assert out.shape == ref.shape == (batch, out_ch, spatial - ksize + 1, spatial - ksize + 1)
    assert jnp.allclose(out, ref, atol=3e-2, rtol=3e-2), "bf16 path mismatch vs reference"

    # f32-operand path (e.g. for v5e numerics) — tight tolerance.
    fused_f32 = jax.jit(functools.partial(
        fused_conv_bn, eps=eps, matmul_dtype=jnp.float32))
    out32 = jax.block_until_ready(fused_f32(x, conv_weight))
    assert jnp.allclose(out32, ref, atol=2e-3, rtol=2e-3), "f32 path mismatch vs reference"

    print("KERNEL_OK")
</pallas_src>

<mosaic_0001>
module attributes {stable_mosaic.version = 11 : i64} {
  func.func @_conv_normalize_kernel(%arg0: i32, %arg1: memref<128x36xbf16, #tpu.memory_space<vmem>>, %arg2: memref<36x128xbf16, #tpu.memory_space<vmem>>, %arg3: memref<2x128xf32, #tpu.memory_space<vmem>>, %arg4: memref<128x128xf32, #tpu.memory_space<vmem>>) attributes {dimension_semantics = [#tpu.dimension_semantics<parallel>], iteration_bounds = array<i64: 4>, scalar_prefetch = 0 : i64, scratch_operands = 0 : i64, tpu.core_type = #tpu.core_type<tc>, window_params = [{transform_indices = @transform_0, window_bounds = array<i64: 128, 36>}, {pipeline_mode = #tpu.pipeline_mode<synchronous>, transform_indices = @transform_1, window_bounds = array<i64: 36, 128>}, {pipeline_mode = #tpu.pipeline_mode<synchronous>, transform_indices = @transform_2, window_bounds = array<i64: 2, 128>}, {transform_indices = @transform_3, window_bounds = array<i64: 128, 128>}]} {
    %c0 = arith.constant 0 : index
    %c0_0 = arith.constant 0 : index
    %0 = vector.load %arg1[%c0, %c0_0] : memref<128x36xbf16, #tpu.memory_space<vmem>>, vector<128x36xbf16>
    %c0_1 = arith.constant 0 : index
    %c0_2 = arith.constant 0 : index
    %1 = vector.load %arg2[%c0_1, %c0_2] : memref<36x128xbf16, #tpu.memory_space<vmem>>, vector<36x128xbf16>
    %cst = arith.constant dense<0.000000e+00> : vector<128x128xf32>
    %2 = tpu.matmul %0, %1, %cst {dimension_numbers = #tpu.dot_dimension_numbers<[1], [0], [0], [1], [0, 0, 1, 1], [], []>} : vector<128x36xbf16>, vector<36x128xbf16>, vector<128x128xf32> -> vector<128x128xf32>
    %c0_3 = arith.constant 0 : index
    %c0_4 = arith.constant 0 : index
    %3 = vector.load %arg3[%c0_3, %c0_4] : memref<2x128xf32, #tpu.memory_space<vmem>>, vector<1x128xf32>
    %c1 = arith.constant 1 : index
    %c0_5 = arith.constant 0 : index
    %4 = vector.load %arg3[%c1, %c0_5] : memref<2x128xf32, #tpu.memory_space<vmem>>, vector<1x128xf32>
    %5 = vector.broadcast %3 : vector<1x128xf32> to vector<128x128xf32>
    %6 = arith.subf %2, %5 : vector<128x128xf32>
    %7 = vector.broadcast %4 : vector<1x128xf32> to vector<128x128xf32>
    %8 = arith.mulf %6, %7 : vector<128x128xf32>
    %c0_6 = arith.constant 0 : index
    %c0_7 = arith.constant 0 : index
    %9 = vector.load %arg4[%c0_6, %c0_7] : memref<128x128xf32, #tpu.memory_space<vmem>>, vector<128x128xf32>
    tpu.vector_store %arg4[%c0_6, %c0_7], %8 {strides = array<i32>} : memref<128x128xf32, #tpu.memory_space<vmem>>, vector<128x128xf32>,
    return
  }
  func.func @transform_0(%arg0: i32) -> (i32, i32) {
    %c0_i32 = arith.constant 0 : i32
    %c0_i32_0 = arith.constant 0 : i32
    return %arg0, %c0_i32 : i32, i32
  }
  func.func @transform_1(%arg0: i32) -> (i32, i32) {
    %c0_i32 = arith.constant 0 : i32
    %c0_i32_0 = arith.constant 0 : i32
    %c0_i32_1 = arith.constant 0 : i32
    return %c0_i32, %c0_i32_0 : i32, i32
  }
  func.func @transform_2(%arg0: i32) -> (i32, i32) {
    %c0_i32 = arith.constant 0 : i32
    %c0_i32_0 = arith.constant 0 : i32
    %c0_i32_1 = arith.constant 0 : i32
    return %c0_i32, %c0_i32_0 : i32, i32
  }
  func.func @transform_3(%arg0: i32) -> (i32, i32) {
    %c0_i32 = arith.constant 0 : i32
    %c0_i32_0 = arith.constant 0 : i32
    return %arg0, %c0_i32 : i32, i32
  }
}

module attributes {stable_mosaic.version = 11 : i64} {
  func.func @_conv_stats_kernel(%arg0: i32, %arg1: memref<128x36xbf16, #tpu.memory_space<vmem>>, %arg2: memref<36x128xbf16, #tpu.memory_space<vmem>>, %arg3: memref<1x2x128xf32, #tpu.memory_space<vmem>>) attributes {dimension_semantics = [#tpu.dimension_semantics<parallel>], iteration_bounds = array<i64: 4>, scalar_prefetch = 0 : i64, scratch_operands = 0 : i64, tpu.core_type = #tpu.core_type<tc>, window_params = [{transform_indices = @transform_0, window_bounds = array<i64: 128, 36>}, {pipeline_mode = #tpu.pipeline_mode<synchronous>, transform_indices = @transform_1, window_bounds = array<i64: 36, 128>}, {transform_indices = @transform_2, window_bounds = array<i64: 1, 2, 128>}]} {
    %c0 = arith.constant 0 : index
    %c0_0 = arith.constant 0 : index
    %0 = vector.load %arg1[%c0, %c0_0] : memref<128x36xbf16, #tpu.memory_space<vmem>>, vector<128x36xbf16>
    %c0_1 = arith.constant 0 : index
    %c0_2 = arith.constant 0 : index
    %1 = vector.load %arg2[%c0_1, %c0_2] : memref<36x128xbf16, #tpu.memory_space<vmem>>, vector<36x128xbf16>
    %cst = arith.constant dense<0.000000e+00> : vector<128x128xf32>
    %2 = tpu.matmul %0, %1, %cst {dimension_numbers = #tpu.dot_dimension_numbers<[1], [0], [0], [1], [0, 0, 1, 1], [], []>} : vector<128x36xbf16>, vector<36x128xbf16>, vector<128x128xf32> -> vector<128x128xf32>
    %cst_3 = arith.constant dense<0.000000e+00> : vector<128xf32>
    %3 = vector.multi_reduction <add>, %2, %cst_3 [0] : vector<128x128xf32> to vector<128xf32>
    %4 = vector.shape_cast %3 : vector<128xf32> to vector<1x128xf32>
    %5 = arith.mulf %2, %2 : vector<128x128xf32>
    %cst_4 = arith.constant dense<0.000000e+00> : vector<128xf32>
    %6 = vector.multi_reduction <add>, %5, %cst_4 [0] : vector<128x128xf32> to vector<128xf32>
    %7 = vector.shape_cast %6 : vector<128xf32> to vector<1x128xf32>
    %8 = tpu.concatenate %4, %7 in 0 : vector<1x128xf32>, vector<1x128xf32> -> vector<2x128xf32>
    %c0_5 = arith.constant 0 : index
    %c0_6 = arith.constant 0 : index
    %c0_7 = arith.constant 0 : index
    %9 = vector.load %arg3[%c0_5, %c0_6, %c0_7] : memref<1x2x128xf32, #tpu.memory_space<vmem>>, vector<1x2x128xf32>
    %10 = vector.shape_cast %9 : vector<1x2x128xf32> to vector<2x128xf32>
    %11 = vector.shape_cast %8 : vector<2x128xf32> to vector<1x2x128xf32>
    tpu.vector_store %arg3[%c0_5, %c0_6, %c0_7], %11 {strides = array<i32>} : memref<1x2x128xf32, #tpu.memory_space<vmem>>, vector<1x2x128xf32>,
    return
  }
  func.func @transform_0(%arg0: i32) -> (i32, i32) {
    %c0_i32 = arith.constant 0 : i32
    %c0_i32_0 = arith.constant 0 : i32
    return %arg0, %c0_i32 : i32, i32
  }
  func.func @transform_1(%arg0: i32) -> (i32, i32) {
    %c0_i32 = arith.constant 0 : i32
    %c0_i32_0 = arith.constant 0 : i32
    %c0_i32_1 = arith.constant 0 : i32
    return %c0_i32, %c0_i32_0 : i32, i32
  }
  func.func @transform_2(%arg0: i32) -> (i32, i32, i32) {
    %c0_i32 = arith.constant 0 : i32
    %c0_i32_0 = arith.constant 0 : i32
    %c0_i32_1 = arith.constant 0 : i32
    return %arg0, %c0_i32, %c0_i32_0 : i32, i32, i32
  }
}

</mosaic_0001>

<bundles_post_ra>
// kernel: fused_conv_bn.2
= control target key start
LH: loop header
LB: loop body
LE: loop exit
PB: predicated region body
PF: predicated region fallthrough
CT: control target
= control target key end

     0   :  { %s573_s9 = smov 0   ;;  %s612_s0 = inlined_call_operand.vmem [shape: bf16[512,36], index: 0, kind: input, shape index: {}]   ;;  %s613_s1 = inlined_call_operand.vmem [shape: bf16[36,128], index: 1, kind: input, shape index: {}]   ;;  %s614_s2 = inlined_call_operand.vmem [shape: f32[4,2,128], index: 2, kind: output, shape index: {}]  }
   0x1 LB: > { %s579_s10 = sadd.s32 4294967295, %s556_s9   ;;  %p465_p0 = scmp.ge.s32.totalorder %s556_s9, 1  ;;  %s556_s9 = sphi %s573_s9, %s12_s9  }
   0x2   : > { %p113_p1 = scmp.lt.s32.totalorder %s556_s9, 5 }
   0x4   : > { %p114_p2 = pnand %p465_p0, %p113_p1 }
   0x5   : > { %v539_v0 = vld [vmem:[%s613_s1] sm:$0xff] (!%p114_p2)   ;;  %v540_v1 = vld [vmem:[%s613_s1 + $0x8] sm:$0xff] (!%p114_p2)   ;;  %s466_s15 = sshll.u32 (!%p114_p2), %s579_s10, 4  ;;  %v541_v2 = vld [vmem:[%s613_s1 + $0x10] ss:$0 sps:$4 sm:$0x33] (!%p114_p2)  }
   0x6   : > { %117 = sbr.rel (%p114_p2) target bundleno = 279 (0x117), region = 28  ;;  %501 = vmatprep.subr.bf16.mxu0 (!%p114_p2), %v539_v0  ;;  %p135_p3 = scmp.lt.s32.totalorder (!%p114_p2), %s466_s15, 63  ;;  %523 = vmatprep.subr.bf16.mxu1 (!%p114_p2), %v539_v0  ;;  %vm246_vm0 = vcmask (!%p114_p2), 1041408   ;;  %vm221_vm1 = vcmask (!%p114_p2), 293888   ;;  %vm405_vm2 = vcmask (!%p114_p2), 1040384  }
   0x7   : > { %502 = vmatpush3.bf16.msra.mxu0 (!%p114_p2), %v539_v0  ;;  %526 = vmatpush3.bf16.msra.mxu1 (!%p114_p2), %v539_v0  ;;  %v248_v3 = vsel (!%p114_p2), %vm246_vm0, %v541_v2, 0  ;;  %p140_p4 = scmp.lt.s32.totalorder (!%p114_p2), %s579_s10, 3 }
   0x8   : > { %503 = vmatprep.subr.bf16.mxu0 (!%p114_p2), %v540_v1  ;;  %524 = vmatprep.subr.bf16.mxu1 (!%p114_p2), %v540_v1 }
   0xb   : > { %504 = vmatpush3.bf16.msra.mxu0 (!%p114_p2), %v540_v1  ;;  %527 = vmatpush3.bf16.msra.mxu1 (!%p114_p2), %v540_v1 }
   0xc   : > { %529 = vmatprep.subr.msk.bf16.mxu0 (!%p114_p2), %vm246_vm0, %v541_v2  ;;  %530 = vmatprep.subr.msk.bf16.mxu1 (!%p114_p2), %vm246_vm0, %v541_v2 }
   0xd   : > { %s616_s15 = smov (!%p135_p3, %s466_s15), 63  ;;  %s618_s10 = smov (!%p140_p4, %s579_s10), 3 }
   0xe   : > { %s467_s18 = sshll.u32 %s616_s15, 2  ;;  %s468_s22 = sshll.u32 %s618_s10, 1 }
   0xf   : > { %s138_s21 = scalar_lea.vmem %s612_s0, %s467_s18  ;;  %506 = vmatpush3.bf16.msra.mxu0 %v248_v3  ;;  %528 = vmatpush3.bf16.msra.mxu1 %v248_v3  ;;  %s143_s25 = scalar_lea.vmem %s614_s2, %s468_s22 }
  0x10   : > { %v542_v4 = vld [vmem:[%s138_s21] sm:$0xff]   ;;  %v543_v5 = vld [vmem:[%s138_s21 + $0x8] sm:$0xff]   ;;  %v544_v6 = vld [vmem:[%s138_s21 + $0x10] sm:$0xff]  }
  0x11   : > { %507 = vmatprep.mubr.msk.bf16.mxu0 %vm221_vm1, %v542_v4  ;;  %v546_v7 = vld [vmem:[%s138_s21 + $0x20] sm:$0xff]   ;;  %v547_v8 = vld [vmem:[%s138_s21 + $0x28] sm:$0xff]   ;;  %v548_v9 = vld [vmem:[%s138_s21 + $0x30] sm:$0xff]  }
  0x12   : > { %508 = vmatmul.mubr.msk.bf16.vlgmr.msra.gmra.mrb[0].mxu0 %vm221_vm1, %v543_v5  ;;  %515 = vmatprep.mubr.msk.bf16.mxu1 %vm221_vm1, %v546_v7  ;;  %v545_v10 = vld [vmem:[%s138_s21 + $0x18] sm:$0xff]  }
  0x13   : > { %511 = vmatprep.mubr.msk.bf16.mxu0 %vm221_vm1, %v544_v6  ;;  %516 = vmatmul.mubr.msk.bf16.vlgmr.msra.gmra.mrb[0].mxu1 %vm221_vm1, %v547_v8  ;;  %v549_v11 = vld [vmem:[%s138_s21 + $0x38] sm:$0xff]  }
  0x14   : > { %519 = vmatprep.mubr.msk.bf16.mxu1 %vm221_vm1, %v548_v9 }
  0x1a   : > { %512 = vmatmul.mubr.msk.bf16.gmra.mrb[4].mxu0 %vm221_vm1, %v545_v10 }
  0x1b   : > { %520 = vmatmul.mubr.msk.bf16.gmra.mrb[4].mxu1 %vm221_vm1, %v549_v11 }
  0xe5   : > { %v509_v12 = vpop.f32.mrb[0].mxu0 }
  0xe6   : > { %v284_v13 = vpop.f32.mrb[1].mxu0  ;;  %v517_v14 = vpop.f32.mrb[0].mxu1  ;;  %v370_v23 = vmul.f32 %v509_v12, %v509_v12 }
  0xe7   : > { %v510_v15 = vpop.f32.mrb[2].mxu0  ;;  %v316_v16 = vpop.f32.mrb[1].mxu1  ;;  %v368_v19 = vmul.f32 %v284_v13, %v284_v13  ;;  %v378_v55 = vmul.f32 %v517_v14, %v517_v14 }
  0xe8   : > { %v287_v17 = vpop.f32.mrb[3].mxu0  ;;  %v518_v18 = vpop.f32.mrb[2].mxu1  ;;  %v371_v26 = vmul.f32 %v510_v15, %v510_v15  ;;  %v376_v49 = vmul.f32 %v316_v16, %v316_v16 }
  0xe9   : > { %v347_v20 = vadd.f32 %v287_v17, %v284_v13  ;;  %v369_v21 = vmul.f32 %v287_v17, %v287_v17  ;;  %v319_v22 = vpop.f32.mrb[3].mxu1  ;;  %v379_v58 = vmul.f32 %v518_v18, %v518_v18 }
  0xea   : > { %v377_v54 = vmul.f32 %v319_v22, %v319_v22 }
  0xeb   : > { %v348_v24 = vadd.f32 %v509_v12, %v347_v20  ;;  %v384_v25 = vadd.f32 %v369_v21, %v368_v19 }
  0xed   : > { %v385_v27 = vadd.f32 %v384_v25, %v370_v23  ;;  %v513_v28 = vpop.f32.mrb[4].mxu0  ;;  %v349_v29 = vadd.f32 %v510_v15, %v348_v24 }
  0xee   : > { %v300_v30 = vpop.f32.mrb[5].mxu0  ;;  %v521_v31 = vpop.f32.mrb[4].mxu1  ;;  %v374_v43 = vmul.f32 %v513_v28, %v513_v28 }
  0xef   : > { %v350_v32 = vadd.f32 %v349_v29, %v300_v30  ;;  %v372_v33 = vmul.f32 %v300_v30, %v300_v30  ;;  %v386_v34 = vadd.f32 %v385_v27, %v371_v26  ;;  %v514_v35 = vpop.f32.mrb[6].mxu0  ;;  %v332_v36 = vpop.f32.mrb[5].mxu1  ;;  %v382_v3 = vmul.f32 %v521_v31, %v521_v31 }
  0xf0   : > { %v303_v37 = vpop.f32.mrb[7].mxu0  ;;  %v522_v38 = vpop.f32.mrb[6].mxu1  ;;  %v375_v46 = vmul.f32 %v514_v35, %v514_v35  ;;  %v380_v61 = vmul.f32 %v332_v36, %v332_v36 }
  0xf1   : > { %v387_v39 = vadd.f32 %v386_v34, %v372_v33  ;;  %v351_v40 = vadd.f32 %v350_v32, %v303_v37  ;;  %v373_v41 = vmul.f32 %v303_v37, %v303_v37  ;;  %v335_v42 = vpop.f32.mrb[7].mxu1  ;;  %v383_v6 = vmul.f32 %v522_v38, %v522_v38 }
  0xf2   : > { %v381_v2 = vmul.f32 %v335_v42, %v335_v42 }
  0xf3   : > { %v352_v44 = vadd.f32 %v513_v28, %v351_v40  ;;  %v388_v45 = vadd.f32 %v387_v39, %v373_v41 }
  0xf5   : > { %v389_v47 = vadd.f32 %v388_v45, %v374_v43  ;;  %v353_v48 = vadd.f32 %v514_v35, %v352_v44 }
  0xf7   : > { %v354_v50 = vadd.f32 %v353_v48, %v316_v16  ;;  %v390_v51 = vadd.f32 %v389_v47, %v375_v46 }
  0xf9   : > { %v391_v52 = vadd.f32 %v390_v51, %v376_v49  ;;  %v355_v53 = vadd.f32 %v354_v50, %v319_v22 }
  0xfb   : > { %v356_v56 = vadd.f32 %v517_v14, %v355_v53  ;;  %v392_v57 = vadd.f32 %v391_v52, %v377_v54 }
  0xfd   : > { %v393_v59 = vadd.f32 %v392_v57, %v378_v55  ;;  %v357_v60 = vadd.f32 %v518_v18, %v356_v56 }
  0xff   : > { %v358_v62 = vadd.f32 %v357_v60, %v332_v36  ;;  %v394_v63 = vadd.f32 %v393_v59, %v379_v58 }
 0x101   : > { %v395_v0 = vadd.f32 %v394_v63, %v380_v61  ;;  %v359_v1 = vadd.f32 %v358_v62, %v335_v42 }
 0x103   : > { %v360_v4 = vadd.f32 %v521_v31, %v359_v1  ;;  %v396_v5 = vadd.f32 %v395_v0, %v381_v2 }
 0x105   : > { %v361_v7 = vadd.f32 %v522_v38, %v360_v4  ;;  %v397_v8 = vadd.f32 %v396_v5, %v382_v3 }
 0x107   : > { %v362_v9 = vrot.slane %v361_v7, 4  ;;  %v398_v10 = vadd.f32 %v397_v8, %v383_v6 }
 0x109   : > { %v363_v11 = vadd.f32 %v362_v9, %v361_v7  ;;  %v399_v12 = vrot.slane %v398_v10, 4 }
 0x10b   : > { %v364_v13 = vrot.slane %v363_v11, 2  ;;  %v400_v14 = vadd.f32 %v399_v12, %v398_v10 }
 0x10d   : > { %v365_v15 = vadd.f32 %v364_v13, %v363_v11  ;;  %v401_v16 = vrot.slane %v400_v14, 2 }
 0x10f   : > { %v366_v17 = vrot.slane %v365_v15, 1  ;;  %v402_v18 = vadd.f32 %v401_v16, %v400_v14 }
 0x111   : > { %v403_v19 = vrot.slane %v402_v18, 1  ;;  %v367_v20 = vadd.f32 %v366_v17, %v365_v15 }
 0x113   : > { %v404_v21 = vadd.f32 %v403_v19, %v402_v18 }
 0x115   : > { %v406_v22 = vsel %vm405_vm2, %v367_v20, %v404_v21 }
 0x116   : > { %407 = vst [vmem:[%s143_s25] sm:$0x3] %v406_v22 }
 0x117 PF: > { %s12_s9 = sadd.s32 1, %s556_s9  }
 0x118   : > { %p9_p5 = scmp.ge.s32.totalorder %s12_s9, 6  }
 0x11a   :  { %11 = sbr.rel (!%p9_p5) target bundleno = 1 (0x1), region = 58 }

// kernel: fused_conv_bn.3
= control target key start
LH: loop header
LB: loop body
LE: loop exit
PB: predicated region body
PF: predicated region fallthrough
CT: control target
= control target key end

     0   :  { %s611_s12 = smov 0   ;;  %s691_s0 = inlined_call_operand.vmem [shape: bf16[512,36], index: 0, kind: input, shape index: {}]   ;;  %s692_s1 = inlined_call_operand.vmem [shape: bf16[36,128], index: 1, kind: input, shape index: {}]   ;;  %s693_s2 = inlined_call_operand.vmem [shape: f32[2,128], index: 2, kind: input, shape index: {}]   ;;  %s694_s3 = inlined_call_operand.vmem [shape: f32[512,128], index: 3, kind: output, shape index: {}]  }
   0x1 LB: > { %s491_s13 = sadd.s32 4294967295, %s589_s12   ;;  %p495_p0 = scmp.ge.s32.totalorder %s589_s12, 1  ;;  %s589_s12 = sphi %s611_s12, %s13_s12  }
   0x2   : > { %p138_p1 = scmp.lt.s32.totalorder %s589_s12, 5 }
   0x4   : > { %p139_p2 = pnand %p495_p0, %p138_p1 }
   0x5   : > { %v572_v0 = vld [vmem:[%s692_s1] sm:$0xff] (!%p139_p2)   ;;  %v573_v1 = vld [vmem:[%s692_s1 + $0x8] sm:$0xff] (!%p139_p2)   ;;  %s496_s18 = sshll.u32 (!%p139_p2), %s491_s13, 4  ;;  %v574_v2 = vld [vmem:[%s692_s1 + $0x10] ss:$0 sps:$4 sm:$0x33] (!%p139_p2)  }
   0x6   : > { %142 = sbr.rel (%p139_p2) target bundleno = 247 (0xf7), region = 32  ;;  %534 = vmatprep.subr.bf16.mxu0 (!%p139_p2), %v572_v0  ;;  %556 = vmatprep.subr.bf16.mxu1 (!%p139_p2), %v572_v0  ;;  %p163_p3 = scmp.lt.s32.totalorder (!%p139_p2), %s496_s18, 63  ;;  %vm276_vm0 = vcmask (!%p139_p2), 1041408   ;;  %vm251_vm1 = vcmask (!%p139_p2), 293888   ;;  %v645_v12 = vld [vmem:[%s693_s2] ss:$0 sm:$0xff] (!%p139_p2) }
   0x7   : > { %535 = vmatpush3.bf16.msra.mxu0 (!%p139_p2), %v572_v0  ;;  %559 = vmatpush3.bf16.msra.mxu1 (!%p139_p2), %v572_v0  ;;  %v278_v3 = vsel (!%p139_p2), %vm276_vm0, %v574_v2, 0  ;;  %v520_v14 = vld [vmem:[%s693_s2 + $0x1] ss:$0 sm:$0xff] (!%p139_p2) }
   0x8   : > { %536 = vmatprep.subr.bf16.mxu0 (!%p139_p2), %v573_v1  ;;  %557 = vmatprep.subr.bf16.mxu1 (!%p139_p2), %v573_v1 }
   0xb   : > { %537 = vmatpush3.bf16.msra.mxu0 (!%p139_p2), %v573_v1  ;;  %560 = vmatpush3.bf16.msra.mxu1 (!%p139_p2), %v573_v1 }
   0xc   : > { %562 = vmatprep.subr.msk.bf16.mxu0 (!%p139_p2), %vm276_vm0, %v574_v2  ;;  %563 = vmatprep.subr.msk.bf16.mxu1 (!%p139_p2), %vm276_vm0, %v574_v2 }
   0xd   : > { %s696_s18 = smov (!%p163_p3, %s496_s18), 63 }
   0xe   : > { %s497_s21 = sshll.u32 %s696_s18, 2  ;;  %s499_s27 = sshll.u32 %s696_s18, 3 }
   0xf   : > { %s166_s24 = scalar_lea.vmem %s691_s0, %s497_s21  ;;  %539 = vmatpush3.bf16.msra.mxu0 %v278_v3  ;;  %561 = vmatpush3.bf16.msra.mxu1 %v278_v3  ;;  %s656_s5 = scalar_lea.vmem %s694_s3, %s499_s27 }
  0x10   : > { %v575_v4 = vld [vmem:[%s166_s24] sm:$0xff]   ;;  %v577_v6 = vld [vmem:[%s166_s24 + $0x8] sm:$0xff]   ;;  %v579_v8 = vld [vmem:[%s166_s24 + $0x10] sm:$0xff]  }
  0x11   : > { %v576_v5 = vld [vmem:[%s166_s24 + $0x20] sm:$0xff]   ;;  %540 = vmatprep.mubr.msk.bf16.mxu0 %vm251_vm1, %v575_v4  ;;  %v578_v7 = vld [vmem:[%s166_s24 + $0x28] sm:$0xff]   ;;  %v580_v9 = vld [vmem:[%s166_s24 + $0x30] sm:$0xff]  }
  0x12   : > { %548 = vmatprep.mubr.msk.bf16.mxu1 %vm251_vm1, %v576_v5  ;;  %541 = vmatmul.mubr.msk.bf16.vlgmr.msra.gmra.mrb[0].mxu0 %vm251_vm1, %v577_v6  ;;  %v581_v10 = vld [vmem:[%s166_s24 + $0x18] sm:$0xff]  }
  0x13   : > { %549 = vmatmul.mubr.msk.bf16.vlgmr.msra.gmra.mrb[0].mxu1 %vm251_vm1, %v578_v7  ;;  %544 = vmatprep.mubr.msk.bf16.mxu0 %vm251_vm1, %v579_v8  ;;  %v582_v11 = vld [vmem:[%s166_s24 + $0x38] sm:$0xff]  }
  0x14   : > { %552 = vmatprep.mubr.msk.bf16.mxu1 %vm251_vm1, %v580_v9 }
  0x1a   : > { %545 = vmatmul.mubr.msk.bf16.gmra.mrb[4].mxu0 %vm251_vm1, %v581_v10 }
  0x1b   : > { %553 = vmatmul.mubr.msk.bf16.gmra.mrb[4].mxu1 %vm251_vm1, %v582_v11 }
  0xe5   : > { %v542_v13 = vpop.f32.mrb[0].mxu0 }
  0xe6   : > { %v550_v15 = vpop.f32.mrb[0].mxu1  ;;  %v385_v16 = vsub.f32 %v542_v13, %v645_v12  ;;  %v314_v18 = vpop.f32.mrb[1].mxu0 }
  0xe7   : > { %v393_v17 = vsub.f32 %v550_v15, %v645_v12  ;;  %v346_v19 = vpop.f32.mrb[1].mxu1  ;;  %v383_v20 = vsub.f32 %v314_v18, %v645_v12  ;;  %v543_v22 = vpop.f32.mrb[2].mxu0 }
  0xe8   : > { %v391_v21 = vsub.f32 %v346_v19, %v645_v12  ;;  %v551_v23 = vpop.f32.mrb[2].mxu1  ;;  %v405_v24 = vmul.f32 %v520_v14, %v385_v16  ;;  %v386_v26 = vsub.f32 %v543_v22, %v645_v12  ;;  %v317_v28 = vpop.f32.mrb[3].mxu0 }
  0xe9   : > { %v413_v25 = vmul.f32 %v520_v14, %v393_v17  ;;  %v394_v27 = vsub.f32 %v551_v23, %v645_v12  ;;  %v349_v29 = vpop.f32.mrb[3].mxu1  ;;  %v403_v30 = vmul.f32 %v520_v14, %v383_v20  ;;  %v384_v32 = vsub.f32 %v317_v28, %v645_v12 }
  0xea   : > { %v411_v31 = vmul.f32 %v520_v14, %v391_v21  ;;  %v392_v33 = vsub.f32 %v349_v29, %v645_v12  ;;  %421 = vst [vmem:[%s656_s5 + $0x10] sm:$0xff] %v405_v24  ;;  %v406_v34 = vmul.f32 %v520_v14, %v386_v26 }
  0xeb   : > { %429 = vst [vmem:[%s656_s5 + $0x50] sm:$0xff] %v413_v25  ;;  %v414_v35 = vmul.f32 %v520_v14, %v394_v27  ;;  %419 = vst [vmem:[%s656_s5] sm:$0xff] %v403_v30  ;;  %v404_v36 = vmul.f32 %v520_v14, %v384_v32 }
  0xec   : > { %427 = vst [vmem:[%s656_s5 + $0x40] sm:$0xff] %v411_v31  ;;  %v412_v37 = vmul.f32 %v520_v14, %v392_v33  ;;  %422 = vst [vmem:[%s656_s5 + $0x18] sm:$0xff] %v406_v34 }
  0xed   : > { %430 = vst [vmem:[%s656_s5 + $0x58] sm:$0xff] %v414_v35  ;;  %420 = vst [vmem:[%s656_s5 + $0x8] sm:$0xff] %v404_v36  ;;  %v546_v38 = vpop.f32.mrb[4].mxu0 }
  0xee   : > { %428 = vst [vmem:[%s656_s5 + $0x48] sm:$0xff] %v412_v37  ;;  %v554_v39 = vpop.f32.mrb[4].mxu1  ;;  %v389_v40 = vsub.f32 %v546_v38, %v645_v12  ;;  %v330_v42 = vpop.f32.mrb[5].mxu0 }
  0xef   : > { %v397_v41 = vsub.f32 %v554_v39, %v645_v12  ;;  %v362_v43 = vpop.f32.mrb[5].mxu1  ;;  %v387_v44 = vsub.f32 %v330_v42, %v645_v12  ;;  %v547_v46 = vpop.f32.mrb[6].mxu0 }
  0xf0   : > { %v395_v45 = vsub.f32 %v362_v43, %v645_v12  ;;  %v555_v47 = vpop.f32.mrb[6].mxu1  ;;  %v409_v48 = vmul.f32 %v520_v14, %v389_v40  ;;  %v390_v50 = vsub.f32 %v547_v46, %v645_v12  ;;  %v333_v52 = vpop.f32.mrb[7].mxu0 }
  0xf1   : > { %v417_v49 = vmul.f32 %v520_v14, %v397_v41  ;;  %v398_v51 = vsub.f32 %v555_v47, %v645_v12  ;;  %v365_v53 = vpop.f32.mrb[7].mxu1  ;;  %v407_v54 = vmul.f32 %v520_v14, %v387_v44  ;;  %v388_v56 = vsub.f32 %v333_v52, %v645_v12 }
  0xf2   : > { %v415_v55 = vmul.f32 %v520_v14, %v395_v45  ;;  %v396_v57 = vsub.f32 %v365_v53, %v645_v12  ;;  %425 = vst [vmem:[%s656_s5 + $0x30] sm:$0xff] %v409_v48  ;;  %v410_v58 = vmul.f32 %v520_v14, %v390_v50 }
  0xf3   : > { %433 = vst [vmem:[%s656_s5 + $0x70] sm:$0xff] %v417_v49  ;;  %v418_v59 = vmul.f32 %v520_v14, %v398_v51  ;;  %423 = vst [vmem:[%s656_s5 + $0x20] sm:$0xff] %v407_v54  ;;  %v408_v60 = vmul.f32 %v520_v14, %v388_v56 }
  0xf4   : > { %431 = vst [vmem:[%s656_s5 + $0x60] sm:$0xff] %v415_v55  ;;  %v416_v61 = vmul.f32 %v520_v14, %v396_v57  ;;  %426 = vst [vmem:[%s656_s5 + $0x38] sm:$0xff] %v410_v58 }
  0xf5   : > { %434 = vst [vmem:[%s656_s5 + $0x78] sm:$0xff] %v418_v59  ;;  %424 = vst [vmem:[%s656_s5 + $0x28] sm:$0xff] %v408_v60 }
  0xf6   : > { %432 = vst [vmem:[%s656_s5 + $0x68] sm:$0xff] %v416_v61 }
  0xf7 PF: > { %s13_s12 = sadd.s32 1, %s589_s12  }
  0xf8   : > { %p10_p4 = scmp.ge.s32.totalorder %s13_s12, 6  }
  0xfa   :  { %12 = sbr.rel (!%p10_p4) target bundleno = 1 (0x1), region = 62 }

</bundles_post_ra>
